<compile_context>
chip_gen: v7x
topology: tpu7x:2x2x1
jax: 0.10.0
libtpu: 0.0.40
codegen_flags: <defaults>
</compile_context>

<pallas_src>
import functools

import jax
import jax.numpy as jnp
from jax import lax
from jax.experimental import pallas as pl
from jax.experimental.pallas import tpu as pltpu


_LANE = 128
_SUBLANE = 8
_MIB = 1024 * 1024


def _round_up(x, m):
    return ((x + m - 1) // m) * m


def _vmem_budgets():
    """Return (working_set_budget_bytes, vmem_limit_bytes) per TPU generation."""
    vmem_cap = None
    try:
        vmem_cap = int(pltpu.get_tpu_info().vmem_capacity_bytes)
    except Exception:
        vmem_cap = None
    if vmem_cap is None:
        vmem_cap = 64 * _MIB  # conservative fallback: assume v7x-sized VMEM
    if vmem_cap >= 96 * _MIB:
        # v5e / v6e: 128 MiB VMEM per core -> ~16 MiB per input block.
        return 64 * _MIB, 96 * _MIB
    # v7x: 64 MiB VMEM per TensorCore -> ~7.5 MiB per input block.
    return 30 * _MIB, 48 * _MIB


def _choose_tiles(rows, cols, itemsize, working_budget):
    """Pick (tile_r, tile_c).

    Accounts for the padded lane layout (last dim -> multiple of 128) and for
    the full double-buffered working set: 2 inputs x 2 buffers x block, plus
    2 buffers of the (tile_r, 1) f32 weight block and the f32 accumulator.
    """
    lane_cols = _round_up(cols, _LANE)
    # Bytes of VMEM consumed per tile row across all resident buffers.
    row_cost = 4 * lane_cols * itemsize + 3 * _LANE * 4

    if _SUBLANE * row_cost > working_budget:
        # Even 8 full-width rows do not fit: tile the column axis as well.
        tile_r = _SUBLANE
        per_lane_col_cost = 4 * _SUBLANE * itemsize  # x,t double-buffered
        tile_c = (working_budget // per_lane_col_cost // _LANE) * _LANE
        tile_c = max(_LANE, min(tile_c, lane_cols))
        return tile_r, tile_c

    max_rows = (working_budget // row_cost // _SUBLANE) * _SUBLANE
    tile_r = max(_SUBLANE, min(max_rows, _round_up(rows, _SUBLANE)))
    return tile_r, cols  # full-width, lane-dense blocks; no column tiling


def _wmse_kernel(x_ref, y_ref, w_ref, o_ref, acc_ref, *,
                 rows, cols, tile_r, tile_c, row_mask, col_mask):
    c = pl.program_id(1)

    @pl.when(c == 0)
    def _():
        acc_ref[...] = jnp.zeros_like(acc_ref)

    d = x_ref[...].astype(jnp.float32) - y_ref[...].astype(jnp.float32)
    sq = d * d
    if col_mask:
        # Ragged last column tile: zero out-of-bounds columns so they don't
        # contaminate the lane-axis reduce of valid rows.
        col_ids = c * tile_c + lax.broadcasted_iota(jnp.int32, (tile_r, tile_c), 1)
        sq = jnp.where(col_ids < cols, sq, 0.0)

    # Unweighted per-row partial sums; per-row weight is applied once per row
    # tile in the epilogue (not per element / per column tile).
    acc_ref[...] += jnp.sum(sq, axis=-1, keepdims=True)

    @pl.when(c == pl.num_programs(1) - 1)
    def _():
        weighted = w_ref[...].astype(jnp.float32) * acc_ref[...]
        if row_mask:
            # Ragged last row tile: drop contributions from out-of-bounds rows
            # (their data and weights are unspecified garbage).
            i = pl.program_id(0)
            row_ids = i * tile_r + lax.broadcasted_iota(jnp.int32, (tile_r, 1), 0)
            weighted = jnp.where(row_ids < rows, weighted, 0.0)
        o_ref[...] = jnp.reshape(jnp.sum(weighted), (1, 1, 1))


def weighted_mse(x, target, weights):
    """mean(weights * (x - target)**2), reduction='mean'; weights shape (C,1,1)."""
    N, C, H, W = x.shape
    rows, cols = N * C, H * W

    x2 = x.reshape(rows, cols)
    t2 = target.reshape(rows, cols)
    # weights: (C, 1, 1) -> per-(n, c)-row scalar, shape (N*C, 1)
    w_row = jnp.broadcast_to(
        weights.reshape(1, C, 1, 1).astype(jnp.float32), (N, C, 1, 1)
    ).reshape(rows, 1)

    working_budget, vmem_limit = _vmem_budgets()
    tile_r, tile_c = _choose_tiles(rows, cols, x2.dtype.itemsize, working_budget)

    num_row_tiles = pl.cdiv(rows, tile_r)
    num_col_tiles = pl.cdiv(cols, tile_c)
    row_mask = (num_row_tiles * tile_r) != rows
    col_mask = (num_col_tiles * tile_c) != cols

    kernel = functools.partial(
        _wmse_kernel, rows=rows, cols=cols, tile_r=tile_r, tile_c=tile_c,
        row_mask=row_mask, col_mask=col_mask)

    partials = pl.pallas_call(
        kernel,
        out_shape=jax.ShapeDtypeStruct((num_row_tiles, 1, 1), jnp.float32),
        grid_spec=pltpu.PrefetchScalarGridSpec(
            num_scalar_prefetch=0,
            grid=(num_row_tiles, num_col_tiles),
            in_specs=[
                pl.BlockSpec((tile_r, tile_c), lambda i, c: (i, c)),
                pl.BlockSpec((tile_r, tile_c), lambda i, c: (i, c)),
                pl.BlockSpec((tile_r, 1), lambda i, c: (i, 0)),
            ],
            out_specs=pl.BlockSpec((1, 1, 1), lambda i, c: (i, 0, 0)),
            scratch_shapes=[pltpu.VMEM((tile_r, 1), jnp.float32)],
        ),
        compiler_params=pltpu.CompilerParams(
            # Row-tile axis is fully independent (one partial per row tile) so
            # it can be sharded across both v7x TensorCores; the column axis
            # carries the accumulator and must stay "arbitrary".
            dimension_semantics=("parallel", "arbitrary"),
            vmem_limit_bytes=vmem_limit,
        ),
    )(x2, t2, w_row)

    # Tiny O(num_row_tiles) finish in plain JAX, plus the mean division by the
    # true element count.
    return jnp.sum(partials) / jnp.float32(rows * cols)


if __name__ == "__main__":
    key = jax.random.PRNGKey(0)
    k1, k2 = jax.random.split(key)

    N, C, H, W = 2, 4, 16, 16
    x = jax.random.normal(k1, (N, C, H, W), dtype=jnp.float32)
    t = jax.random.normal(k2, (N, C, H, W), dtype=jnp.float32)

    # Deterministic per-channel weights buffer, shape (C, 1, 1) as in __init__.
    weights = ((jnp.arange(C, dtype=jnp.float32) + 1.0) / C).reshape(C, 1, 1)

    out = weighted_mse(x, t, weights)
    out = jax.block_until_ready(out)

    # Pure-JAX reference (mirrors torch.mean(self.weights * (input-target)**2))
    ref = jnp.mean(weights.reshape(1, C, 1, 1) * (x - t) ** 2)
    assert jnp.allclose(out, ref, rtol=1e-6, atol=1e-6), (out, ref)

    print("KERNEL_OK")
</pallas_src>

<mosaic_0001>
module attributes {stable_mosaic.version = 11 : i64} {
  func.func @_wmse_kernel(%arg0: i32, %arg1: i32, %arg2: memref<8x256xf32, #tpu.memory_space<vmem>>, %arg3: memref<8x256xf32, #tpu.memory_space<vmem>>, %arg4: memref<8x1xf32, #tpu.memory_space<vmem>>, %arg5: memref<1x1x1xf32, #tpu.memory_space<vmem>>, %arg6: memref<8x1xf32, #tpu.memory_space<vmem>>) attributes {dimension_semantics = [#tpu.dimension_semantics<parallel>, #tpu.dimension_semantics<arbitrary>], iteration_bounds = array<i64: 1, 1>, scalar_prefetch = 0 : i64, scratch_operands = 1 : i64, tpu.core_type = #tpu.core_type<tc>, window_params = [{transform_indices = @transform_0, window_bounds = array<i64: 8, 256>}, {transform_indices = @transform_1, window_bounds = array<i64: 8, 256>}, {transform_indices = @transform_2, window_bounds = array<i64: 8, 1>}, {transform_indices = @transform_3, window_bounds = array<i64: 1, 1, 1>}]} {
    %c0_i32 = arith.constant 0 : i32
    %0 = arith.cmpi eq, %arg1, %c0_i32 : i32
    %1 = arith.extui %0 : i1 to i32
    %c0_i32_0 = arith.constant 0 : i32
    %2 = arith.cmpi ne, %1, %c0_i32_0 : i32
    scf.if %2 {
      %cst_10 = arith.constant 0.000000e+00 : f32
      %15 = vector.broadcast %cst_10 : f32 to vector<8x1xf32>
      %c0_11 = arith.constant 0 : index
      %c0_12 = arith.constant 0 : index
      %16 = vector.load %arg6[%c0_11, %c0_12] : memref<8x1xf32, #tpu.memory_space<vmem>>, vector<8x1xf32>
      tpu.vector_store %arg6[%c0_11, %c0_12], %15 {strides = array<i32>} : memref<8x1xf32, #tpu.memory_space<vmem>>, vector<8x1xf32>,
    } else {
    }
    %c0 = arith.constant 0 : index
    %c0_1 = arith.constant 0 : index
    %3 = vector.load %arg2[%c0, %c0_1] : memref<8x256xf32, #tpu.memory_space<vmem>>, vector<8x256xf32>
    %c0_2 = arith.constant 0 : index
    %c0_3 = arith.constant 0 : index
    %4 = vector.load %arg3[%c0_2, %c0_3] : memref<8x256xf32, #tpu.memory_space<vmem>>, vector<8x256xf32>
    %5 = arith.subf %3, %4 : vector<8x256xf32>
    %6 = arith.mulf %5, %5 : vector<8x256xf32>
    %c0_4 = arith.constant 0 : index
    %c0_5 = arith.constant 0 : index
    %7 = vector.load %arg6[%c0_4, %c0_5] : memref<8x1xf32, #tpu.memory_space<vmem>>, vector<8x1xf32>
    %cst = arith.constant dense<0.000000e+00> : vector<8xf32>
    %8 = vector.multi_reduction <add>, %6, %cst [1] : vector<8x256xf32> to vector<8xf32>
    %9 = vector.shape_cast %8 : vector<8xf32> to vector<8x1xf32>
    %10 = arith.addf %7, %9 : vector<8x1xf32>
    %c0_6 = arith.constant 0 : index
    %c0_7 = arith.constant 0 : index
    %11 = vector.load %arg6[%c0_6, %c0_7] : memref<8x1xf32, #tpu.memory_space<vmem>>, vector<8x1xf32>
    tpu.vector_store %arg6[%c0_6, %c0_7], %10 {strides = array<i32>} : memref<8x1xf32, #tpu.memory_space<vmem>>, vector<8x1xf32>,
    %c0_i32_8 = arith.constant 0 : i32
    %12 = arith.cmpi eq, %arg1, %c0_i32_8 : i32
    %13 = arith.extui %12 : i1 to i32
    %c0_i32_9 = arith.constant 0 : i32
    %14 = arith.cmpi ne, %13, %c0_i32_9 : i32
    scf.if %14 {
      %c0_10 = arith.constant 0 : index
      %c0_11 = arith.constant 0 : index
      %15 = vector.load %arg4[%c0_10, %c0_11] : memref<8x1xf32, #tpu.memory_space<vmem>>, vector<8x1xf32>
      %c0_12 = arith.constant 0 : index
      %c0_13 = arith.constant 0 : index
      %16 = vector.load %arg6[%c0_12, %c0_13] : memref<8x1xf32, #tpu.memory_space<vmem>>, vector<8x1xf32>
      %17 = arith.mulf %15, %16 : vector<8x1xf32>
      %18 = vector.shape_cast %17 : vector<8x1xf32> to vector<1x8x1xf32>
      %cst_14 = arith.constant dense<0.000000e+00> : vector<1xf32>
      %19 = vector.multi_reduction <add>, %18, %cst_14 [1, 2] : vector<1x8x1xf32> to vector<1xf32>
      %20 = vector.shape_cast %19 : vector<1xf32> to vector<1x1x1xf32>
      %21 = vector.extract %20[0, 0, 0] : f32 from vector<1x1x1xf32>
      %22 = vector.broadcast %21 : f32 to vector<1x1x1xf32>
      %c0_15 = arith.constant 0 : index
      %c0_16 = arith.constant 0 : index
      %c0_17 = arith.constant 0 : index
      %23 = vector.load %arg5[%c0_15, %c0_16, %c0_17] : memref<1x1x1xf32, #tpu.memory_space<vmem>>, vector<1x1x1xf32>
      tpu.vector_store %arg5[%c0_15, %c0_16, %c0_17], %22 {strides = array<i32>} : memref<1x1x1xf32, #tpu.memory_space<vmem>>, vector<1x1x1xf32>,
    } else {
    }
    return
  }
  func.func @transform_0(%arg0: i32, %arg1: i32) -> (i32, i32) {
    %c0_i32 = arith.constant 0 : i32
    return %arg0, %arg1 : i32, i32
  }
  func.func @transform_1(%arg0: i32, %arg1: i32) -> (i32, i32) {
    %c0_i32 = arith.constant 0 : i32
    return %arg0, %arg1 : i32, i32
  }
  func.func @transform_2(%arg0: i32, %arg1: i32) -> (i32, i32) {
    %c0_i32 = arith.constant 0 : i32
    %c0_i32_0 = arith.constant 0 : i32
    return %arg0, %c0_i32 : i32, i32
  }
  func.func @transform_3(%arg0: i32, %arg1: i32) -> (i32, i32, i32) {
    %c0_i32 = arith.constant 0 : i32
    %c0_i32_0 = arith.constant 0 : i32
    %c0_i32_1 = arith.constant 0 : i32
    return %arg0, %c0_i32, %c0_i32_0 : i32, i32, i32
  }
}

</mosaic_0001>

<bundles_post_ra>
// kernel: tpu_custom_call.1
= control target key start
LH: loop header
LB: loop body
LE: loop exit
PB: predicated region body
PF: predicated region fallthrough
CT: control target
= control target key end

     0   :  { %8 = vsyncpa [#allocation4], 0  ;;  %s239_s0 = inlined_call_operand.hbm [shape: f32[8,256], index: 0, kind: input, shape index: {}]   ;;  %s240_s1 = inlined_call_operand.hbm [shape: f32[8,256], index: 1, kind: input, shape index: {}]   ;;  %s241_s2 = inlined_call_operand.vmem [shape: f32[8,1], index: 2, kind: input, shape index: {}]   ;;  %s242_s3 = inlined_call_operand.hbm [shape: f32[1,1,1], index: 3, kind: output, shape index: {}]  }
   0x1   :  { %9 = vsyncpa [#allocation7], 0 }
   0x2   :  { %10 = vsyncpa [#allocation5], 0  ;;  %s173_s12 = smov [#allocation3]   ;;  %s174_s14 = smov [#allocation6]  }
   0x3   :  { %s17_s13 = sshll.u32 %s173_s12, 4  ;;  %s27_s15 = sshll.u32 %s174_s14, 4  ;;  %s18_s13 = int_to_ptr.vmem [resolvable:$true] %s17_s13  ;;  %s28_s15 = int_to_ptr.vmem [resolvable:$true] %s27_s15 }
   0x4   :  { %s101_s18 = scalar_lea.hbm %s239_s0, 256 }
   0x5   :  { %p102_p0 = scmp.ne.s32.totalorder %s239_s0, %s101_s18  ;;  %p105_p1 = scmp.lt.u32.totalorder %s101_s18, %s239_s0 }
   0x7   :  { %p107_p2 = pnand %p105_p1, %p102_p0 }
   0x9   :  { %110 = shalt.err (!%p107_p2)
}
   0xa   :  { %s111_s23 = scalar_lea.vmem %s18_s13, 256  ;;  %p116_p4 = scmp.lt.s32.totalorder %s18_s13, %s18_s13 }
   0xb   :  { %p112_p3 = scmp.ne.s32.totalorder %s18_s13, %s111_s23  ;;  %p117_p5 = scmp.lt.s32.totalorder %s111_s23, %s111_s23 }
   0xd   :  { %p118_p6 = por %p117_p5, %p116_p4 }
   0xf   :  { %p119_p7 = pnand %p118_p6, %p112_p3 }
  0x11   :  { %122 = shalt.err (!%p119_p7)
}
  0x12   :  { %20 = dma.hbm_to_vmem [thread:$0]  %s239_s0, 256, %s18_s13, [#allocation4]  }
  0x13   :  { %s123_s28 = scalar_lea.hbm %s240_s1, 256 }
  0x14   :  { %p124_p8 = scmp.ne.s32.totalorder %s240_s1, %s123_s28  ;;  %p127_p9 = scmp.lt.u32.totalorder %s123_s28, %s240_s1 }
  0x16   :  { %p129_p10 = pnand %p127_p9, %p124_p8 }
  0x18   :  { %132 = shalt.err (!%p129_p10)
}
  0x19   :  { %s133_s6 = scalar_lea.vmem %s28_s15, 256  ;;  %p138_p12 = scmp.lt.s32.totalorder %s28_s15, %s28_s15 }
  0x1a   :  { %p134_p11 = scmp.ne.s32.totalorder %s28_s15, %s133_s6  ;;  %p139_p13 = scmp.lt.s32.totalorder %s133_s6, %s133_s6 }
  0x1c   :  { %p140_p0 = por %p139_p13, %p138_p12 }
  0x1e   :  { %p141_p1 = pnand %p140_p0, %p134_p11 }
  0x20   :  { %144 = shalt.err (!%p141_p1)
}
  0x21   :  { %30 = dma.hbm_to_vmem [thread:$0]  %s240_s1, 256, %s28_s15, [#allocation7]  }
  0x22   :  { %167 = dma.done.wait [#allocation4], 256  }
  0x23   :  { %168 = vsyncadd [#allocation4], 4294967040 }
  0x24   :  { %169 = dma.done.wait [#allocation7], 256  }
  0x25   :  { %170 = vsyncadd [#allocation7], 4294967040  ;;  %vm43_vm0 = vcmask 7168   ;;  %v175_v0 = vmov 0.0   ;;  %v45_v1 = vld [vmem:[#allocation3] sm:$0xff]  ;;  %v46_v2 = vld [vmem:[#allocation3 + $0x8] sm:$0xff] }
  0x26   :  { %44 = vst.msk [vmem:[#allocation2] sm:$0xff] %vm43_vm0, %v175_v0  ;;  %v47_v3 = vld [vmem:[#allocation6] sm:$0xff]  ;;  %v48_v4 = vld [vmem:[#allocation6 + $0x8] sm:$0xff]  ;;  %s176_s9 = smov [#allocation8]   ;;  %vm77_vm1 = vcmask 0  }
  0x27   :  { %v49_v5 = vsub.f32 %v45_v1, %v47_v3  ;;  %v50_v6 = vsub.f32 %v46_v2, %v48_v4  ;;  %v63_v13 = vld [vmem:[%s241_s2] sm:$0xff]  ;;  %s85_s10 = sshll.u32 %s176_s9, 4  ;;  %s86_s10 = int_to_ptr.vmem [resolvable:$true] %s85_s10 }
  0x28   :  { %s145_s2 = scalar_lea.vmem %s86_s10, 16  ;;  %s149_s12 = scalar_lea.vmem %s86_s10, 32 }
  0x29   :  { %v51_v7 = vmul.f32 %v49_v5, %v49_v5  ;;  %v52_v8 = vmul.f32 %v50_v6, %v50_v6  ;;  %p146_p2 = scmp.ne.s32.totalorder %s86_s10, %s145_s2  ;;  %p150_p3 = scmp.lt.s32.totalorder %s86_s10, %s86_s10 }
  0x2a   :  { %p151_p4 = scmp.lt.s32.totalorder %s149_s12, %s145_s2 }
  0x2b   :  { %v54_v9 = vadd.f32 %v52_v8, %v51_v7 }
  0x2c   :  { %p152_p5 = por %p151_p4, %p150_p3 }
  0x2d   :  { %55 = vadd.xlane.f32.xlu0 %v54_v9  ;;  %v53_v10 = vld [vmem:[#allocation2] sm:$0xff] }
  0x2e   :  { %p153_p6 = pnand %p152_p5, %p146_p2 }
  0xba   :  { %v56_v11 = vpop.xlane.xlu0 %55 }
  0xbb   :  { %v57_v12 = vadd.f32 %v56_v11, %v53_v10 }
  0xbd   :  { %59 = vst.msk [vmem:[#allocation2] sm:$0xff] %vm43_vm0, %v57_v12 }
  0xc4   :  { %v64_v14 = vld [vmem:[#allocation2] sm:$0xff] }
  0xc5   :  { %v65_v15 = vmul.f32 %v64_v14, %v63_v13 }
  0xc7   :  { %v66_v16 = vsel %vm43_vm0, %v65_v15, 0.0 }
  0xc8   :  { %67 = vadd.xlane.f32.xlu0 %v66_v16 }
 0x155   :  { %v68_v17 = vpop.xlane.xlu0 %67 }
 0x156   :  { %v69_v18 = vrot.slane %v68_v17, 4 }
 0x158   :  { %v70_v19 = vadd.f32 %v69_v18, %v68_v17 }
 0x15a   :  { %v71_v20 = vrot.slane %v70_v19, 2 }
 0x15c   :  { %v72_v21 = vadd.f32 %v71_v20, %v70_v19 }
 0x15e   :  { %v73_v22 = vrot.slane %v72_v21, 1 }
 0x160   :  { %v74_v23 = vadd.f32 %v73_v22, %v72_v21 }
 0x162   :  { %95 = vpush %v74_v23 }
 0x193   :  { %s96_s11 = spop %95 }
 0x194   :  { %v76_v24 = vstv %s96_s11 }
 0x195   :  { %78 = vst.msk [vmem:[#allocation8] sm:$0x1] %vm77_vm1, %v76_v24 }
 0x196   :  { %156 = shalt.err (!%p153_p6)
}
 0x197   :  { %s157_s15 = scalar_lea.hbm %s242_s3, 16 }
 0x198   :  { %p158_p7 = scmp.ne.s32.totalorder %s242_s3, %s157_s15  ;;  %p161_p8 = scmp.lt.u32.totalorder %s157_s15, %s242_s3 }
 0x19a   :  { %p163_p9 = pnand %p161_p8, %p158_p7 }
 0x19c   :  { %166 = shalt.err (!%p163_p9)
}
 0x19d   :  { %88 = dma.vmem_to_hbm [thread:$0]  %s86_s10, 16, %s242_s3, [#allocation5]  }
 0x19e   :  { %171 = dma.done.wait [#allocation5], 16  }
 0x19f   :  { %172 = vsyncadd [#allocation5], 4294967280 }
 0x1a0   :  { %92 = vsyncpa [#allocation4], 1 }
 0x1a1   :  { %93 = vsyncpa [#allocation7], 1 }
 0x1a2   :  { %94 = vsyncpa [#allocation5], 1 }

</bundles_post_ra>
